<compile_context>
chip_gen: v7x
topology: tpu7x:2x2x1
jax: 0.10.0
libtpu: 0.0.40
codegen_flags: <defaults>
</compile_context>

<pallas_src>
import jax
import jax.numpy as jnp
from jax.experimental import pallas as pl
from jax.experimental.pallas import tpu as pltpu


# --------------------------------------------------------------------------
# Hardware probes (guarded; fall back to conservative defaults).
# --------------------------------------------------------------------------
def _vmem_capacity_bytes():
    try:
        return int(pltpu.get_tpu_info().vmem_capacity_bytes)
    except Exception:
        return 64 << 20  # v7x-sized conservative default (v5e/v6e have 128 MiB)


def _detect_num_tensorcores():
    """TensorCores per device: 2 on megacore (v4/v5p) and v7x, else 1."""
    try:
        kind = str(getattr(jax.devices()[0], "device_kind", "")).lower()
        kind = kind.replace(" ", "")
        if ("v4" in kind) or ("v5p" in kind) or ("v7" in kind):
            return 2
    except Exception:
        pass
    return 1


# --------------------------------------------------------------------------
# Lane-dense kernel (B divides 128): flat data viewed as (R, 128).
# --------------------------------------------------------------------------
def _make_lane_kernel(tm, r, gpr, needs_mask):
    """tm: tile rows; r: valid rows; gpr = 128//B windows per 128-lane row."""
    vec_acc = (tm % 8 == 0)

    def kernel(seg_ref, p_ref, t_ref, out_ref, acc_sq_ref, acc_gr_ref):
        c = pl.program_id(0)
        j = pl.program_id(1)
        nj = pl.num_programs(1)

        if vec_acc:
            @pl.when(j == 0)
            def _init():
                acc_sq_ref[...] = jnp.zeros_like(acc_sq_ref)
                acc_gr_ref[...] = jnp.zeros_like(acc_gr_ref)

            def accumulate(diff):
                d2 = diff * diff
                acc_sq_ref[...] += jnp.sum(d2.reshape(tm // 8, 8, 128), axis=0)
                gsum = jnp.dot(diff, seg_ref[...],
                               preferred_element_type=jnp.float32)
                g2 = gsum * gsum
                acc_gr_ref[...] += jnp.sum(g2.reshape(tm // 8, 8, gpr), axis=0)

            row0 = (c * nj + j) * tm  # logical first row of this tile

            if needs_mask:
                full = row0 + tm <= r

                @pl.when(full)
                def _fast():
                    accumulate(p_ref[...].astype(jnp.float32)
                               - t_ref[...].astype(jnp.float32))

                @pl.when(jnp.logical_not(full))
                def _edge():
                    # Partial last tile / clamped duplicate tile: mask rows >= r
                    # so padded / duplicated data contributes exactly zero.
                    rows = row0 + jax.lax.broadcasted_iota(
                        jnp.int32, (tm, 128), 0)
                    diff = (p_ref[...].astype(jnp.float32)
                            - t_ref[...].astype(jnp.float32))
                    accumulate(jnp.where(rows < r, diff, 0.0))
            else:
                accumulate(p_ref[...].astype(jnp.float32)
                           - t_ref[...].astype(jnp.float32))

            @pl.when(j == nj - 1)
            def _finalize():
                out_ref[0, 0] = jnp.sum(acc_sq_ref[...])
                out_ref[0, 1] = jnp.sum(acc_gr_ref[...])
        else:
            # Single small block (tm == r, not sublane-aligned): direct path,
            # scratch unused.  All rows are valid here by construction.
            diff = (p_ref[...].astype(jnp.float32)
                    - t_ref[...].astype(jnp.float32))
            out_ref[0, 0] = jnp.sum(diff * diff)
            gsum = jnp.dot(diff, seg_ref[...],
                           preferred_element_type=jnp.float32)
            out_ref[0, 1] = jnp.sum(gsum * gsum)

    return kernel


# --------------------------------------------------------------------------
# Fallback kernel (B does not divide 128): tiled over (GT, B) group blocks.
# --------------------------------------------------------------------------
def _make_group_kernel(gt, g, needs_mask):
    def kernel(p_ref, t_ref, out_ref):
        j = pl.program_id(0)
        nj = pl.num_programs(0)

        @pl.when(j == 0)
        def _init():
            out_ref[0, 0] = jnp.float32(0.0)
            out_ref[0, 1] = jnp.float32(0.0)

        diff = p_ref[...].astype(jnp.float32) - t_ref[...].astype(jnp.float32)
        if needs_mask:
            rows = j * gt + jax.lax.broadcasted_iota(jnp.int32, diff.shape, 0)
            diff = jnp.where(rows < g, diff, 0.0)
        out_ref[0, 0] += jnp.sum(diff * diff)
        gsum = jnp.sum(diff, axis=1, keepdims=True)
        out_ref[0, 1] += jnp.sum(gsum * gsum)

    return kernel


# --------------------------------------------------------------------------
# Wrapper.
# --------------------------------------------------------------------------
def mean_regularized_loss(predictions, targets, batch_size, lambda_weight=1.0,
                          *, block_rows=None, num_cores=None):
    """JAX/Pallas equivalent of MeanRegularizedLoss.forward."""
    B = int(batch_size)
    lam = float(lambda_weight)
    p = jnp.reshape(predictions, (-1,))
    t = jnp.reshape(targets, (-1,))
    if p.shape != t.shape:
        raise ValueError("predictions and targets must have the same size")
    n = int(p.shape[0])
    if n < B:
        raise ValueError(f"need at least batch_size={B} elements, got {n}")
    g = (n - B) // B + 1          # conv1d output length (kernel=B, stride=B)
    used = g * B                  # elements seen by the conv (tail dropped)

    itemsize = max(p.dtype.itemsize, t.dtype.itemsize)
    vmem_cap = _vmem_capacity_bytes()
    sum_sq = jnp.zeros((), jnp.float32)
    sum_grp = jnp.zeros((), jnp.float32)

    if 128 % B == 0:
        # ------------ lane-dense path (B divides the 128-lane width) ------------
        r = n // 128              # full 128-lane rows fed to the kernel
        n_main = r * 128          # all of [0, n_main) counts for BOTH terms
        gpr = 128 // B            # conv windows per 128-lane row

        if r > 0:
            p2 = p[:n_main].reshape(r, 128)
            t2 = t[:n_main].reshape(r, 128)

            lane = jnp.arange(128, dtype=jnp.int32)
            seg = (lane[:, None] // B ==
                   jnp.arange(gpr, dtype=jnp.int32)[None, :]).astype(jnp.float32)

            if block_rows is None:
                per_buf = min(8 << 20, vmem_cap // 8)      # per input tile buffer
                tm = max(8, (per_buf // (128 * itemsize)) // 8 * 8)
            else:
                tm = max(1, int(block_rows))
            if tm >= r:
                tm = r                                      # single full block
            else:
                tm = max(8, (tm // 8) * 8)                  # sublane-aligned
            nb = -(-r // tm)

            nc = _detect_num_tensorcores() if num_cores is None else int(num_cores)
            nc = max(1, min(nc, nb))
            jc = -(-nb // nc)
            needs_mask = (r % tm != 0) or (nc * jc != nb)

            vmem_limit = int(max(32 << 20,
                                 min(vmem_cap - (16 << 20),
                                     4 * tm * 128 * itemsize + (8 << 20))))
            if nc > 1 and hasattr(pltpu, "CORE_PARALLEL"):
                dims = (pltpu.CORE_PARALLEL, pltpu.ARBITRARY)
            else:
                dims = ("parallel" if nc > 1 else "arbitrary", "arbitrary")

            def row_block(c, j):
                # Clamp so the DMA never addresses past the array; the in-kernel
                # mask zeroes any duplicated / out-of-range logical block.
                return (jnp.minimum(c * jc + j, nb - 1), 0)

            kernel = _make_lane_kernel(tm, r, gpr, needs_mask)
            partials = pl.pallas_call(
                kernel,
                out_shape=jax.ShapeDtypeStruct((nc, 2), jnp.float32),
                grid_spec=pltpu.PrefetchScalarGridSpec(
                    num_scalar_prefetch=0,
                    grid=(nc, jc),
                    in_specs=[
                        pl.BlockSpec((128, gpr), lambda c, j: (0, 0)),  # resident
                        pl.BlockSpec((tm, 128), row_block),
                        pl.BlockSpec((tm, 128), row_block),
                    ],
                    out_specs=pl.BlockSpec((1, 2), lambda c, j: (c, 0),
                                           memory_space=pltpu.SMEM),
                    scratch_shapes=[pltpu.VMEM((8, 128), jnp.float32),
                                    pltpu.VMEM((8, gpr), jnp.float32)],
                ),
                compiler_params=pltpu.CompilerParams(
                    dimension_semantics=dims,
                    vmem_limit_bytes=vmem_limit),
            )(seg, p2, t2)

            sum_sq = sum_sq + jnp.sum(partials[:, 0])
            sum_grp = sum_grp + jnp.sum(partials[:, 1])

        if n_main < n:
            # <128 tail elements: whole conv windows (B | 128) + MSE-only elems.
            td = p[n_main:].astype(jnp.float32) - t[n_main:].astype(jnp.float32)
            sum_sq = sum_sq + jnp.sum(td * td)
            gt_n = (used - n_main) // B
            if gt_n > 0:
                gs = jnp.sum(td[:gt_n * B].reshape(gt_n, B), axis=1)
                sum_grp = sum_grp + jnp.sum(gs * gs)
    else:
        # ------------ fallback: B does not divide 128 (tiled over groups) ------------
        # TODO(synk): a lane-dense lcm(B,128)-row layout would raise lane/DMA
        # utilization here; this tiling removes the old single-block size ceiling.
        p_grp = p[:used].reshape(g, B)
        t_grp = t[:used].reshape(g, B)

        lanes_pad = -(-B // 128) * 128
        row_bytes = lanes_pad * itemsize
        cap_rows = max(8, int((4 << 20) // row_bytes))
        gt = g if g <= cap_rows else max(8, (cap_rows // 8) * 8)
        nbg = -(-g // gt)
        needs_mask_g = (g % gt != 0)
        vmem_limit_g = int(max(32 << 20,
                               min(vmem_cap - (16 << 20),
                                   4 * gt * row_bytes + (16 << 20))))

        sums = pl.pallas_call(
            _make_group_kernel(gt, g, needs_mask_g),
            out_shape=jax.ShapeDtypeStruct((1, 2), jnp.float32),
            grid_spec=pltpu.PrefetchScalarGridSpec(
                num_scalar_prefetch=0,
                grid=(nbg,),
                in_specs=[pl.BlockSpec((gt, B), lambda j: (j, 0)),
                          pl.BlockSpec((gt, B), lambda j: (j, 0))],
                out_specs=pl.BlockSpec((1, 2), lambda j: (0, 0),
                                       memory_space=pltpu.SMEM),
            ),
            compiler_params=pltpu.CompilerParams(
                dimension_semantics=("arbitrary",),
                vmem_limit_bytes=vmem_limit_g),
        )(p_grp, t_grp)
        sum_sq = sum_sq + sums[0, 0]
        sum_grp = sum_grp + sums[0, 1]
        if used < n:
            td = p[used:].astype(jnp.float32) - t[used:].astype(jnp.float32)
            sum_sq = sum_sq + jnp.sum(td * td)

    mse = sum_sq / jnp.float32(n)
    bias = sum_grp / jnp.float32(B * B * g)   # window_sum/B are the conv outputs
    return mse + jnp.float32(lam) * bias


# --------------------------------------------------------------------------
# Pure-JAX reference (mirrors the PyTorch forward).
# --------------------------------------------------------------------------
def reference_loss(predictions, targets, batch_size, lambda_weight=1.0):
    B = batch_size
    p = jnp.reshape(predictions, (-1,)).astype(jnp.float32)
    t = jnp.reshape(targets, (-1,)).astype(jnp.float32)
    mse = jnp.mean((p - t) ** 2)
    g = (p.shape[0] - B) // B + 1
    used = g * B
    mp = jnp.mean(jnp.reshape(p[:used], (g, B)), axis=1)
    mt = jnp.mean(jnp.reshape(t[:used], (g, B)), axis=1)
    bias = jnp.mean((mp - mt) ** 2)
    return mse + lambda_weight * bias


if __name__ == "__main__":
    key = jax.random.PRNGKey(0)
    cases = [
        # (shape, batch_size, extra kwargs)
        ((8, 32), 8, {}),                        # n=256: single small block
        ((32, 1024), 8, dict(block_rows=64)),    # multi-tile grid, fast path only
        ((5, 41), 8, {}),                        # ragged: <128-elem tail in wrapper
        ((300, 41), 8, dict(block_rows=64)),     # ragged + partial last tile (mask)
        ((6, 10), 6, {}),                        # B does not divide 128 -> fallback
    ]
    for i, (shape, bs, kw) in enumerate(cases):
        kp, kt = jax.random.split(jax.random.fold_in(key, i))
        preds = jax.random.normal(kp, shape, dtype=jnp.float32)
        targs = jax.random.normal(kt, shape, dtype=jnp.float32)
        got = jax.block_until_ready(
            mean_regularized_loss(preds, targs, bs, lambda_weight=1.0, **kw))
        want = reference_loss(preds, targs, bs, 1.0)
        assert jnp.allclose(got, want, rtol=1e-4, atol=1e-4), (shape, bs, got, want)
    print("KERNEL_OK")
</pallas_src>

<mosaic_0001>
module attributes {stable_mosaic.version = 11 : i64} {
  func.func @kernel(%arg0: i32, %arg1: i32, %arg2: memref<128x16xf32, #tpu.memory_space<vmem>>, %arg3: memref<2x128xf32, #tpu.memory_space<vmem>>, %arg4: memref<2x128xf32, #tpu.memory_space<vmem>>, %arg5: memref<1x2xf32, #tpu.memory_space<smem>>, %arg6: memref<8x128xf32, #tpu.memory_space<vmem>>, %arg7: memref<8x16xf32, #tpu.memory_space<vmem>>) attributes {dimension_semantics = [#tpu.dimension_semantics<arbitrary>, #tpu.dimension_semantics<arbitrary>], iteration_bounds = array<i64: 1, 1>, scalar_prefetch = 0 : i64, scratch_operands = 2 : i64, tpu.core_type = #tpu.core_type<tc>, window_params = [{pipeline_mode = #tpu.pipeline_mode<synchronous>, transform_indices = @transform_0, window_bounds = array<i64: 128, 16>}, {transform_indices = @transform_1, window_bounds = array<i64: 2, 128>}, {transform_indices = @transform_2, window_bounds = array<i64: 2, 128>}, {transform_indices = @transform_3, window_bounds = array<i64: 1, 2>}]} {
    %c0 = arith.constant 0 : index
    %c0_0 = arith.constant 0 : index
    %0 = vector.load %arg3[%c0, %c0_0] : memref<2x128xf32, #tpu.memory_space<vmem>>, vector<2x128xf32>
    %c0_1 = arith.constant 0 : index
    %c0_2 = arith.constant 0 : index
    %1 = vector.load %arg4[%c0_1, %c0_2] : memref<2x128xf32, #tpu.memory_space<vmem>>, vector<2x128xf32>
    %2 = arith.subf %0, %1 : vector<2x128xf32>
    %3 = arith.mulf %2, %2 : vector<2x128xf32>
    %4 = vector.shape_cast %3 : vector<2x128xf32> to vector<1x2x128xf32>
    %cst = arith.constant dense<0.000000e+00> : vector<1xf32>
    %5 = vector.multi_reduction <add>, %4, %cst [1, 2] : vector<1x2x128xf32> to vector<1xf32>
    %6 = vector.shape_cast %5 : vector<1xf32> to vector<1x1x1xf32>
    %7 = vector.extract %6[0, 0, 0] : f32 from vector<1x1x1xf32>
    %c0_3 = arith.constant 0 : index
    %c0_4 = arith.constant 0 : index
    %8 = memref.load %arg5[%c0_3, %c0_4] : memref<1x2xf32, #tpu.memory_space<smem>>
    memref.store %7, %arg5[%c0_3, %c0_4] : memref<1x2xf32, #tpu.memory_space<smem>>
    %c0_5 = arith.constant 0 : index
    %c0_6 = arith.constant 0 : index
    %9 = vector.load %arg2[%c0_5, %c0_6] : memref<128x16xf32, #tpu.memory_space<vmem>>, vector<128x16xf32>
    %cst_7 = arith.constant dense<0.000000e+00> : vector<2x16xf32>
    %10 = tpu.matmul %2, %9, %cst_7 {dimension_numbers = #tpu.dot_dimension_numbers<[1], [0], [0], [1], [0, 0, 1, 1], [], []>} : vector<2x128xf32>, vector<128x16xf32>, vector<2x16xf32> -> vector<2x16xf32>
    %11 = arith.mulf %10, %10 : vector<2x16xf32>
    %12 = vector.shape_cast %11 : vector<2x16xf32> to vector<1x2x16xf32>
    %cst_8 = arith.constant dense<0.000000e+00> : vector<1xf32>
    %13 = vector.multi_reduction <add>, %12, %cst_8 [1, 2] : vector<1x2x16xf32> to vector<1xf32>
    %14 = vector.shape_cast %13 : vector<1xf32> to vector<1x1x1xf32>
    %15 = vector.extract %14[0, 0, 0] : f32 from vector<1x1x1xf32>
    %c0_9 = arith.constant 0 : index
    %c1 = arith.constant 1 : index
    %16 = memref.load %arg5[%c0_9, %c1] : memref<1x2xf32, #tpu.memory_space<smem>>
    memref.store %15, %arg5[%c0_9, %c1] : memref<1x2xf32, #tpu.memory_space<smem>>
    return
  }
  func.func @transform_0(%arg0: i32, %arg1: i32) -> (i32, i32) {
    %c0_i32 = arith.constant 0 : i32
    %c0_i32_0 = arith.constant 0 : i32
    %c0_i32_1 = arith.constant 0 : i32
    return %c0_i32, %c0_i32_0 : i32, i32
  }
  func.func @transform_1(%arg0: i32, %arg1: i32) -> (i32, i32) {
    %c1_i32 = arith.constant 1 : i32
    %0 = arith.muli %arg0, %c1_i32 : i32
    %1 = arith.addi %0, %arg1 : i32
    %c0_i32 = arith.constant 0 : i32
    %2 = arith.minsi %1, %c0_i32 : i32
    %c0_i32_0 = arith.constant 0 : i32
    %c0_i32_1 = arith.constant 0 : i32
    return %2, %c0_i32_0 : i32, i32
  }
  func.func @transform_2(%arg0: i32, %arg1: i32) -> (i32, i32) {
    %c1_i32 = arith.constant 1 : i32
    %0 = arith.muli %arg0, %c1_i32 : i32
    %1 = arith.addi %0, %arg1 : i32
    %c0_i32 = arith.constant 0 : i32
    %2 = arith.minsi %1, %c0_i32 : i32
    %c0_i32_0 = arith.constant 0 : i32
    %c0_i32_1 = arith.constant 0 : i32
    return %2, %c0_i32_0 : i32, i32
  }
  func.func @transform_3(%arg0: i32, %arg1: i32) -> (i32, i32) {
    %c0_i32 = arith.constant 0 : i32
    %c0_i32_0 = arith.constant 0 : i32
    return %arg0, %c0_i32 : i32, i32
  }
}

</mosaic_0001>

<bundles_post_ra>
// kernel: tpu_custom_call.1
= control target key start
LH: loop header
LB: loop body
LE: loop exit
PB: predicated region body
PF: predicated region fallthrough
CT: control target
= control target key end

     0   :  { %v307_v3 = vmov 0.0|0.0   ;;  %vm308_vm0 = vmmov 0   ;;  %v309_v6 = vmov 0.0   ;;  %s397_s0 = inlined_call_operand.vmem [shape: f32[128,16], index: 0, kind: input, shape index: {}]   ;;  %s398_s1 = inlined_call_operand.vmem [shape: f32[2,128], index: 1, kind: input, shape index: {}]   ;;  %s399_s2 = inlined_call_operand.vmem [shape: f32[2,128], index: 2, kind: input, shape index: {}]   ;;  %s400_s3 = inlined_call_operand.hbm [shape: f32[1,2], index: 3, kind: output, shape index: {}]  }
   0x1   :  { %v86_v0 = vld [vmem:[%s397_s0] sm:$0xff]  ;;  %v87_v1 = vld [vmem:[%s397_s0 + $0x8] sm:$0xff]  ;;  %v88_v2 = vld [vmem:[%s397_s0 + $0x10] sm:$0xff]  ;;  %263 = vmatprep.subr.bf16.mxu0 %v307_v3  ;;  %260 = vmatprep.mubr.msk.f32.mxu0 %vm308_vm0, %v309_v6 }
   0x2   :  { %v264_v4 = vpack.c.bf16 %v87_v1, %v86_v0  ;;  %v89_v5 = vld [vmem:[%s397_s0 + $0x18] sm:$0xff]  ;;  %v90_v8 = vld [vmem:[%s397_s0 + $0x20] sm:$0xff]  ;;  %v91_v9 = vld [vmem:[%s397_s0 + $0x28] sm:$0xff] }
   0x3   :  { %v267_v7 = vpack.c.bf16 %v89_v5, %v88_v2  ;;  %v69_v10 = vld [vmem:[%s398_s1] sm:$0x3] }
   0x4   :  { %265 = vmatpush3.bf16.msra.mxu0 %v264_v4  ;;  %v70_v11 = vld [vmem:[%s399_s2] sm:$0x3] }
   0x5   :  { %266 = vmatprep.subr.bf16.mxu0 %v307_v3  ;;  %v71_v12 = vsub.f32 %v69_v10, %v70_v11 }
   0x6   :  { %8 = vsyncpa [#allocation5], 0  ;;  %v270_v13 = vpack.c.bf16 %v91_v9, %v90_v8  ;;  %vm73_vm1 = vcmask 1041408   ;;  %v92_v14 = vld [vmem:[%s397_s0 + $0x30] sm:$0xff]  ;;  %v93_v15 = vld [vmem:[%s397_s0 + $0x38] sm:$0xff]  ;;  %vm173_vm2 = vcmask 123904  }
   0x7   :  { %v72_v16 = vmul.f32 %v71_v12, %v71_v12  ;;  %v273_v18 = vpack.c.bf16 %v93_v15, %v92_v14  ;;  %v94_v19 = vld [vmem:[%s397_s0 + $0x40] sm:$0xff]  ;;  %v95_v20 = vld [vmem:[%s397_s0 + $0x48] sm:$0xff]  ;;  %v96_v22 = vld [vmem:[%s397_s0 + $0x50] sm:$0xff]  ;;  %s295_s22 = scalar_lea.hbm %s400_s3, 16 }
   0x8   :  { %268 = vmatpush3.bf16.msra.mxu0 %v267_v7  ;;  %v276_v21 = vpack.c.bf16 %v95_v20, %v94_v19  ;;  %v97_v23 = vld [vmem:[%s397_s0 + $0x58] sm:$0xff]  ;;  %v98_v25 = vld [vmem:[%s397_s0 + $0x60] sm:$0xff]  ;;  %v99_v26 = vld [vmem:[%s397_s0 + $0x68] sm:$0xff]  ;;  %p296_p0 = scmp.ne.s32.totalorder %s400_s3, %s295_s22  ;;  %p299_p1 = scmp.lt.u32.totalorder %s295_s22, %s400_s3 }
   0x9   :  { %269 = vmatprep.subr.bf16.mxu0 %v307_v3  ;;  %v74_v17 = vsel %vm73_vm1, %v72_v16, 0.0  ;;  %v279_v24 = vpack.c.bf16 %v97_v23, %v96_v22  ;;  %v282_v27 = vpack.c.bf16 %v99_v26, %v98_v25  ;;  %v100_v28 = vld [vmem:[%s397_s0 + $0x70] sm:$0xff]  ;;  %v101_v29 = vld [vmem:[%s397_s0 + $0x78] sm:$0xff] }
   0xa   :  { %75 = vadd.xlane.f32.xlu0 %v74_v17  ;;  %v285_v30 = vpack.c.bf16 %v101_v29, %v100_v28  ;;  %p301_p2 = pnand %p299_p1, %p296_p0 }
   0xc   :  { %271 = vmatpush3.bf16.msra.mxu0 %v270_v13 }
   0xd   :  { %272 = vmatprep.subr.bf16.mxu0 %v307_v3 }
  0x10   :  { %274 = vmatpush3.bf16.msra.mxu0 %v273_v18 }
  0x11   :  { %275 = vmatprep.subr.bf16.mxu0 %v307_v3 }
  0x14   :  { %277 = vmatpush3.bf16.msra.mxu0 %v276_v21 }
  0x15   :  { %278 = vmatprep.subr.bf16.mxu0 %v307_v3 }
  0x18   :  { %280 = vmatpush3.bf16.msra.mxu0 %v279_v24 }
  0x19   :  { %281 = vmatprep.subr.bf16.mxu0 %v307_v3 }
  0x1c   :  { %283 = vmatpush3.bf16.msra.mxu0 %v282_v27 }
  0x1d   :  { %284 = vmatprep.subr.bf16.mxu0 %v307_v3 }
  0x20   :  { %286 = vmatpush3.bf16.msra.mxu0 %v285_v30 }
  0x23   :  { %261 = vmatmul.mubr.f32.vlgmr.msra.gmra.mrb[0].mxu0 %v71_v12 }
  0x97   :  { %v76_v31 = vpop.xlane.xlu0 %75 }
  0x98   :  { %v77_v35 = vrot.slane %v76_v31, 4 }
  0x9a   :  { %v78_v37 = vadd.f32 %v77_v35, %v76_v31 }
  0x9c   :  { %v79_v38 = vrot.slane %v78_v37, 2 }
  0x9e   :  { %v80_v39 = vadd.f32 %v79_v38, %v78_v37 }
  0xa0   :  { %v81_v40 = vrot.slane %v80_v39, 1 }
  0xa2   :  { %v82_v41 = vadd.f32 %v81_v40, %v80_v39 }
  0xa4   :  { %287 = vpush %v82_v41 }
  0xd5   :  { %s288_s0 = spop %287 }
  0xd6   :  { %85 = sst [smem:[#allocation4]] %s288_s0 }
  0xf6   :  { %v168_v32 = vpop.f32.mrb[0].mxu0 }
  0xf7   :  { %v172_v33 = vmul.f32 %v168_v32, %v168_v32  ;;  %v262_v34 = vpop.f32.mrb[1].mxu0 }
  0xf9   :  { %v174_v36 = vsel %vm173_vm2, %v172_v33, 0.0 }
  0xfa   :  { %175 = vadd.xlane.f32.xlu0 %v174_v36 }
 0x187   :  { %v176_v42 = vpop.xlane.xlu0 %175 }
 0x188   :  { %v177_v43 = vrot.slane %v176_v42, 4 }
 0x18a   :  { %v178_v44 = vadd.f32 %v177_v43, %v176_v42 }
 0x18c   :  { %v179_v45 = vrot.slane %v178_v44, 2 }
 0x18e   :  { %v180_v46 = vadd.f32 %v179_v45, %v178_v44 }
 0x190   :  { %v181_v47 = vrot.slane %v180_v46, 1 }
 0x192   :  { %v182_v48 = vadd.f32 %v181_v47, %v180_v46 }
 0x194   :  { %289 = vpush %v182_v48 }
 0x1c5   :  { %s290_s19 = spop %289 }
 0x1c6   :  { %185 = sst [smem:[#allocation4 + $0x1]] %s290_s19 }
 0x1c7   :  { %304 = shalt.err (!%p301_p2)
}
 0x1c8   :  { %s310_s27 = smov [#allocation4]  }
 0x1c9   :  { %193 = dma.smem_to_hbm %s310_s27, 16, %s400_s3, [#allocation5]  }
 0x1ca   :  { %305 = dma.done.wait [#allocation5], 16  }
 0x1cb   :  { %306 = vsyncadd [#allocation5], 4294967280 }
 0x1cc   :  { %197 = sfence }
 0x1cd   :  { %198 = vsyncpa [#allocation5], 1 }

</bundles_post_ra>
